<compile_context>
chip_gen: v7x
topology: tpu7x:2x2x1
jax: 0.10.0
libtpu: 0.0.40
codegen_flags: <defaults>
</compile_context>

<pallas_src>
import functools

import jax
import jax.numpy as jnp
from jax.experimental import pallas as pl
from jax.experimental.pallas import tpu as pltpu

LANES = 512            # lane-dense slab width (multiple of 128)
MAX_BLOCK_ROWS = 512   # ~1 MiB per f32 block buffer
NUM_CORES = 2          # leading "parallel" axis (v7x 2-TC); harmless on 1-TC chips


def _bce_rescale_kernel(s_ref, m_ref, t_ref,
                        joint_ref, lpart_ref, mpart_ref,
                        loss_acc, mask_acc,
                        *, min_iou, scale, bias):
    i = pl.program_id(1)

    @pl.when(i == 0)
    def _init():
        loss_acc[...] = jnp.zeros_like(loss_acc)
        mask_acc[...] = jnp.zeros_like(mask_acc)

    scores = s_ref[...].astype(jnp.float32)
    masks = m_ref[...].astype(jnp.float32)
    targets = t_ref[...].astype(jnp.float32)

    # sigmoid(x) = 0.5 * tanh(0.5 * x) + 0.5 -> single EUP push.
    joint_prob = (0.5 * jnp.tanh(0.5 * scores) + 0.5) * masks

    # target_prob rescale + bias shift + clamp to [0, 1] (divide folded into scale).
    tp = (targets - min_iou) * scale
    tp = jnp.where(tp > 0.0, tp + bias, tp)
    tp = jnp.clip(tp, 0.0, 1.0)

    # binary_cross_entropy(joint_prob, tp, reduction='none'), PyTorch-style
    # log clamp at -100, then masked.
    log_p = jnp.maximum(jnp.log(joint_prob), -100.0)
    log_1mp = jnp.maximum(jnp.log(1.0 - joint_prob), -100.0)
    loss = -(tp * log_p + (1.0 - tp) * log_1mp) * masks

    joint_ref[...] = joint_prob.astype(joint_ref.dtype)

    # Pure-VPU elementwise accumulation each step; cross-lane reduce only once.
    loss_acc[...] += loss
    mask_acc[...] += masks

    @pl.when(i == pl.num_programs(1) - 1)
    def _finalize():
        lpart_ref[...] = jnp.sum(loss_acc[...], axis=0, keepdims=True)[None]
        mpart_ref[...] = jnp.sum(mask_acc[...], axis=0, keepdims=True)[None]


def bce_rescale_loss(scores, masks, targets, *, min_iou, max_iou, bias):
    """Returns (loss_value, joint_prob) matching BCERescaleLoss.forward."""
    assert scores.shape == masks.shape == targets.shape
    orig_shape = scores.shape
    total = 1
    for d in orig_shape:
        total *= d

    # Lane-dense slab: flatten, pad (mask=0 padding), reshape to (rows, LANES).
    rows = -(-total // LANES)
    rows = -(-rows // 8) * 8
    block_rows = min(MAX_BLOCK_ROWS, rows)
    chunk = NUM_CORES * block_rows
    rows_padded = -(-rows // chunk) * chunk
    n_inner = rows_padded // chunk
    pad = rows_padded * LANES - total

    def to_slab(x):
        flat = jnp.ravel(x)
        if pad:
            flat = jnp.pad(flat, (0, pad))
        return flat.reshape(rows_padded, LANES)

    s2, m2, t2 = to_slab(scores), to_slab(masks), to_slab(targets)

    scale = (1.0 - float(bias)) / (float(max_iou) - float(min_iou))
    kernel = functools.partial(
        _bce_rescale_kernel,
        min_iou=float(min_iou), scale=scale, bias=float(bias))

    data_map = lambda c, i: (c * n_inner + i, 0)
    part_map = lambda c, i: (c, 0, 0)

    # VMEM budget: 4 streamed arrays x 2 pipeline buffers + 2 accumulators + slack.
    block_bytes = block_rows * LANES * 4
    vmem_limit = int(4 * 2 * block_bytes + 2 * block_bytes + (4 << 20))

    joint2, lpart, mpart = pl.pallas_call(
        kernel,
        out_shape=(
            jax.ShapeDtypeStruct((rows_padded, LANES), scores.dtype),
            jax.ShapeDtypeStruct((NUM_CORES, 1, LANES), jnp.float32),
            jax.ShapeDtypeStruct((NUM_CORES, 1, LANES), jnp.float32),
        ),
        grid_spec=pltpu.PrefetchScalarGridSpec(
            num_scalar_prefetch=0,
            grid=(NUM_CORES, n_inner),
            in_specs=[
                pl.BlockSpec((block_rows, LANES), data_map),
                pl.BlockSpec((block_rows, LANES), data_map),
                pl.BlockSpec((block_rows, LANES), data_map),
            ],
            out_specs=(
                pl.BlockSpec((block_rows, LANES), data_map),
                pl.BlockSpec((1, 1, LANES), part_map),
                pl.BlockSpec((1, 1, LANES), part_map),
            ),
            scratch_shapes=[
                pltpu.VMEM((block_rows, LANES), jnp.float32),
                pltpu.VMEM((block_rows, LANES), jnp.float32),
            ],
        ),
        compiler_params=pltpu.CompilerParams(
            dimension_semantics=("parallel", "arbitrary"),
            vmem_limit_bytes=vmem_limit,
        ),
    )(s2, m2, t2)

    loss_value = jnp.sum(lpart) / jnp.sum(mpart)
    joint_prob = joint2.reshape(-1)[:total].reshape(orig_shape)
    return loss_value, joint_prob


def _reference(scores, masks, targets, *, min_iou, max_iou, bias):
    joint_prob = jax.nn.sigmoid(scores) * masks
    tp = (targets - min_iou) * (1.0 - bias) / (max_iou - min_iou)
    tp = jnp.where(tp > 0.0, tp + bias, tp)
    tp = jnp.clip(tp, 0.0, 1.0)
    log_p = jnp.maximum(jnp.log(joint_prob), -100.0)
    log_1mp = jnp.maximum(jnp.log(1.0 - joint_prob), -100.0)
    loss = -(tp * log_p + (1.0 - tp) * log_1mp) * masks
    return jnp.sum(loss) / jnp.sum(masks), joint_prob


if __name__ == "__main__":
    # cfg-equivalent hyperparameters (deterministic, in-script).
    MIN_IOU, MAX_IOU, BIAS = 0.5, 1.0, 0.0

    key = jax.random.PRNGKey(0)
    k1, k2, k3 = jax.random.split(key, 3)
    B, C, H, W = 2, 4, 16, 16  # NCHW, matching PyTorch convention

    scores = jax.random.normal(k1, (B, C, H, W), dtype=jnp.float32)
    # binary validity mask (0/1), like the 2D temporal map mask
    masks = (jax.random.uniform(k2, (B, C, H, W)) > 0.3).astype(jnp.float32)
    # IoU targets in [0, 1]
    targets = jax.random.uniform(k3, (B, C, H, W), dtype=jnp.float32)

    loss_value, joint_prob = bce_rescale_loss(
        scores, masks, targets, min_iou=MIN_IOU, max_iou=MAX_IOU, bias=BIAS)
    loss_value = jax.block_until_ready(loss_value)
    joint_prob = jax.block_until_ready(joint_prob)

    ref_loss, ref_joint = _reference(
        scores, masks, targets, min_iou=MIN_IOU, max_iou=MAX_IOU, bias=BIAS)

    assert jnp.allclose(loss_value, ref_loss, rtol=1e-5, atol=1e-5)
    assert jnp.allclose(joint_prob, ref_joint, rtol=1e-5, atol=1e-6)

    print("KERNEL_OK")
</pallas_src>

<mosaic_0001>
module attributes {stable_mosaic.version = 11 : i64} {
  func.func @_bce_rescale_kernel(%arg0: i32, %arg1: i32, %arg2: memref<8x512xf32, #tpu.memory_space<vmem>>, %arg3: memref<8x512xf32, #tpu.memory_space<vmem>>, %arg4: memref<8x512xf32, #tpu.memory_space<vmem>>, %arg5: memref<8x512xf32, #tpu.memory_space<vmem>>, %arg6: memref<1x1x512xf32, #tpu.memory_space<vmem>>, %arg7: memref<1x1x512xf32, #tpu.memory_space<vmem>>, %arg8: memref<8x512xf32, #tpu.memory_space<vmem>>, %arg9: memref<8x512xf32, #tpu.memory_space<vmem>>) attributes {dimension_semantics = [#tpu.dimension_semantics<parallel>, #tpu.dimension_semantics<arbitrary>], iteration_bounds = array<i64: 2, 1>, scalar_prefetch = 0 : i64, scratch_operands = 2 : i64, tpu.core_type = #tpu.core_type<tc>, window_params = [{transform_indices = @transform_0, window_bounds = array<i64: 8, 512>}, {transform_indices = @transform_1, window_bounds = array<i64: 8, 512>}, {transform_indices = @transform_2, window_bounds = array<i64: 8, 512>}, {transform_indices = @transform_3, window_bounds = array<i64: 8, 512>}, {transform_indices = @transform_4, window_bounds = array<i64: 1, 1, 512>}, {transform_indices = @transform_5, window_bounds = array<i64: 1, 1, 512>}]} {
    %c0_i32 = arith.constant 0 : i32
    %0 = arith.cmpi eq, %arg1, %c0_i32 : i32
    %1 = arith.extui %0 : i1 to i32
    %c0_i32_0 = arith.constant 0 : i32
    %2 = arith.cmpi ne, %1, %c0_i32_0 : i32
    scf.if %2 {
      %cst_31 = arith.constant 0.000000e+00 : f32
      %53 = vector.broadcast %cst_31 : f32 to vector<8x512xf32>
      %c0_32 = arith.constant 0 : index
      %c0_33 = arith.constant 0 : index
      %54 = vector.load %arg8[%c0_32, %c0_33] : memref<8x512xf32, #tpu.memory_space<vmem>>, vector<8x512xf32>
      tpu.vector_store %arg8[%c0_32, %c0_33], %53 {strides = array<i32>} : memref<8x512xf32, #tpu.memory_space<vmem>>, vector<8x512xf32>,
      %cst_34 = arith.constant 0.000000e+00 : f32
      %55 = vector.broadcast %cst_34 : f32 to vector<8x512xf32>
      %c0_35 = arith.constant 0 : index
      %c0_36 = arith.constant 0 : index
      %56 = vector.load %arg9[%c0_35, %c0_36] : memref<8x512xf32, #tpu.memory_space<vmem>>, vector<8x512xf32>
      tpu.vector_store %arg9[%c0_35, %c0_36], %55 {strides = array<i32>} : memref<8x512xf32, #tpu.memory_space<vmem>>, vector<8x512xf32>,
    } else {
    }
    %c0 = arith.constant 0 : index
    %c0_1 = arith.constant 0 : index
    %3 = vector.load %arg2[%c0, %c0_1] : memref<8x512xf32, #tpu.memory_space<vmem>>, vector<8x512xf32>
    %c0_2 = arith.constant 0 : index
    %c0_3 = arith.constant 0 : index
    %4 = vector.load %arg3[%c0_2, %c0_3] : memref<8x512xf32, #tpu.memory_space<vmem>>, vector<8x512xf32>
    %c0_4 = arith.constant 0 : index
    %c0_5 = arith.constant 0 : index
    %5 = vector.load %arg4[%c0_4, %c0_5] : memref<8x512xf32, #tpu.memory_space<vmem>>, vector<8x512xf32>
    %cst = arith.constant 5.000000e-01 : f32
    %6 = vector.broadcast %cst : f32 to vector<8x512xf32>
    %7 = arith.mulf %6, %3 : vector<8x512xf32>
    %8 = math.tanh %7 : vector<8x512xf32>
    %cst_6 = arith.constant 5.000000e-01 : f32
    %9 = vector.broadcast %cst_6 : f32 to vector<8x512xf32>
    %10 = arith.mulf %9, %8 : vector<8x512xf32>
    %cst_7 = arith.constant 5.000000e-01 : f32
    %11 = vector.broadcast %cst_7 : f32 to vector<8x512xf32>
    %12 = arith.addf %10, %11 : vector<8x512xf32>
    %13 = arith.mulf %12, %4 : vector<8x512xf32>
    %cst_8 = arith.constant 5.000000e-01 : f32
    %14 = vector.broadcast %cst_8 : f32 to vector<8x512xf32>
    %15 = arith.subf %5, %14 : vector<8x512xf32>
    %cst_9 = arith.constant 2.000000e+00 : f32
    %16 = vector.broadcast %cst_9 : f32 to vector<8x512xf32>
    %17 = arith.mulf %15, %16 : vector<8x512xf32>
    %cst_10 = arith.constant 0.000000e+00 : f32
    %18 = vector.broadcast %cst_10 : f32 to vector<8x512xf32>
    %19 = arith.cmpf ogt, %17, %18 : vector<8x512xf32>
    %cst_11 = arith.constant 0.000000e+00 : f32
    %20 = vector.broadcast %cst_11 : f32 to vector<8x512xf32>
    %21 = arith.addf %17, %20 : vector<8x512xf32>
    %22 = arith.select %19, %21, %17 : vector<8x512xi1>, vector<8x512xf32>
    %cst_12 = arith.constant 0.000000e+00 : f32
    %cst_13 = arith.constant 1.000000e+00 : f32
    %23 = vector.broadcast %cst_12 : f32 to vector<8x512xf32>
    %24 = arith.maximumf %23, %22 : vector<8x512xf32>
    %25 = vector.broadcast %cst_13 : f32 to vector<8x512xf32>
    %26 = arith.minimumf %25, %24 : vector<8x512xf32>
    %27 = math.log %13 : vector<8x512xf32>
    %cst_14 = arith.constant -1.000000e+02 : f32
    %28 = vector.broadcast %cst_14 : f32 to vector<8x512xf32>
    %29 = arith.maximumf %27, %28 : vector<8x512xf32>
    %cst_15 = arith.constant 1.000000e+00 : f32
    %30 = vector.broadcast %cst_15 : f32 to vector<8x512xf32>
    %31 = arith.subf %30, %13 : vector<8x512xf32>
    %32 = math.log %31 : vector<8x512xf32>
    %cst_16 = arith.constant -1.000000e+02 : f32
    %33 = vector.broadcast %cst_16 : f32 to vector<8x512xf32>
    %34 = arith.maximumf %32, %33 : vector<8x512xf32>
    %35 = arith.mulf %26, %29 : vector<8x512xf32>
    %cst_17 = arith.constant 1.000000e+00 : f32
    %36 = vector.broadcast %cst_17 : f32 to vector<8x512xf32>
    %37 = arith.subf %36, %26 : vector<8x512xf32>
    %38 = arith.mulf %37, %34 : vector<8x512xf32>
    %39 = arith.addf %35, %38 : vector<8x512xf32>
    %cst_18 = arith.constant 0.000000e+00 : f32
    %40 = vector.broadcast %cst_18 : f32 to vector<8x512xf32>
    %41 = arith.subf %40, %39 : vector<8x512xf32>
    %42 = arith.mulf %41, %4 : vector<8x512xf32>
    %c0_19 = arith.constant 0 : index
    %c0_20 = arith.constant 0 : index
    %43 = vector.load %arg5[%c0_19, %c0_20] : memref<8x512xf32, #tpu.memory_space<vmem>>, vector<8x512xf32>
    tpu.vector_store %arg5[%c0_19, %c0_20], %13 {strides = array<i32>} : memref<8x512xf32, #tpu.memory_space<vmem>>, vector<8x512xf32>,
    %c0_21 = arith.constant 0 : index
    %c0_22 = arith.constant 0 : index
    %44 = vector.load %arg8[%c0_21, %c0_22] : memref<8x512xf32, #tpu.memory_space<vmem>>, vector<8x512xf32>
    %45 = arith.addf %44, %42 : vector<8x512xf32>
    %c0_23 = arith.constant 0 : index
    %c0_24 = arith.constant 0 : index
    %46 = vector.load %arg8[%c0_23, %c0_24] : memref<8x512xf32, #tpu.memory_space<vmem>>, vector<8x512xf32>
    tpu.vector_store %arg8[%c0_23, %c0_24], %45 {strides = array<i32>} : memref<8x512xf32, #tpu.memory_space<vmem>>, vector<8x512xf32>,
    %c0_25 = arith.constant 0 : index
    %c0_26 = arith.constant 0 : index
    %47 = vector.load %arg9[%c0_25, %c0_26] : memref<8x512xf32, #tpu.memory_space<vmem>>, vector<8x512xf32>
    %48 = arith.addf %47, %4 : vector<8x512xf32>
    %c0_27 = arith.constant 0 : index
    %c0_28 = arith.constant 0 : index
    %49 = vector.load %arg9[%c0_27, %c0_28] : memref<8x512xf32, #tpu.memory_space<vmem>>, vector<8x512xf32>
    tpu.vector_store %arg9[%c0_27, %c0_28], %48 {strides = array<i32>} : memref<8x512xf32, #tpu.memory_space<vmem>>, vector<8x512xf32>,
    %c0_i32_29 = arith.constant 0 : i32
    %50 = arith.cmpi eq, %arg1, %c0_i32_29 : i32
    %51 = arith.extui %50 : i1 to i32
    %c0_i32_30 = arith.constant 0 : i32
    %52 = arith.cmpi ne, %51, %c0_i32_30 : i32
    scf.if %52 {
      %c0_31 = arith.constant 0 : index
      %c0_32 = arith.constant 0 : index
      %53 = vector.load %arg8[%c0_31, %c0_32] : memref<8x512xf32, #tpu.memory_space<vmem>>, vector<8x512xf32>
      %cst_33 = arith.constant dense<0.000000e+00> : vector<512xf32>
      %54 = vector.multi_reduction <add>, %53, %cst_33 [0] : vector<8x512xf32> to vector<512xf32>
      %55 = vector.shape_cast %54 : vector<512xf32> to vector<1x512xf32>
      %56 = vector.shape_cast %55 : vector<1x512xf32> to vector<1x1x512xf32>
      %c0_34 = arith.constant 0 : index
      %c0_35 = arith.constant 0 : index
      %c0_36 = arith.constant 0 : index
      %57 = vector.load %arg6[%c0_34, %c0_35, %c0_36] : memref<1x1x512xf32, #tpu.memory_space<vmem>>, vector<1x1x512xf32>
      tpu.vector_store %arg6[%c0_34, %c0_35, %c0_36], %56 {strides = array<i32>} : memref<1x1x512xf32, #tpu.memory_space<vmem>>, vector<1x1x512xf32>,
      %c0_37 = arith.constant 0 : index
      %c0_38 = arith.constant 0 : index
      %58 = vector.load %arg9[%c0_37, %c0_38] : memref<8x512xf32, #tpu.memory_space<vmem>>, vector<8x512xf32>
      %cst_39 = arith.constant dense<0.000000e+00> : vector<512xf32>
      %59 = vector.multi_reduction <add>, %58, %cst_39 [0] : vector<8x512xf32> to vector<512xf32>
      %60 = vector.shape_cast %59 : vector<512xf32> to vector<1x512xf32>
      %61 = vector.shape_cast %60 : vector<1x512xf32> to vector<1x1x512xf32>
      %c0_40 = arith.constant 0 : index
      %c0_41 = arith.constant 0 : index
      %c0_42 = arith.constant 0 : index
      %62 = vector.load %arg7[%c0_40, %c0_41, %c0_42] : memref<1x1x512xf32, #tpu.memory_space<vmem>>, vector<1x1x512xf32>
      tpu.vector_store %arg7[%c0_40, %c0_41, %c0_42], %61 {strides = array<i32>} : memref<1x1x512xf32, #tpu.memory_space<vmem>>, vector<1x1x512xf32>,
    } else {
    }
    return
  }
  func.func @transform_0(%arg0: i32, %arg1: i32) -> (i32, i32) {
    %c1_i32 = arith.constant 1 : i32
    %0 = arith.muli %arg0, %c1_i32 : i32
    %1 = arith.addi %0, %arg1 : i32
    %c0_i32 = arith.constant 0 : i32
    %c0_i32_0 = arith.constant 0 : i32
    return %1, %c0_i32 : i32, i32
  }
  func.func @transform_1(%arg0: i32, %arg1: i32) -> (i32, i32) {
    %c1_i32 = arith.constant 1 : i32
    %0 = arith.muli %arg0, %c1_i32 : i32
    %1 = arith.addi %0, %arg1 : i32
    %c0_i32 = arith.constant 0 : i32
    %c0_i32_0 = arith.constant 0 : i32
    return %1, %c0_i32 : i32, i32
  }
  func.func @transform_2(%arg0: i32, %arg1: i32) -> (i32, i32) {
    %c1_i32 = arith.constant 1 : i32
    %0 = arith.muli %arg0, %c1_i32 : i32
    %1 = arith.addi %0, %arg1 : i32
    %c0_i32 = arith.constant 0 : i32
    %c0_i32_0 = arith.constant 0 : i32
    return %1, %c0_i32 : i32, i32
  }
  func.func @transform_3(%arg0: i32, %arg1: i32) -> (i32, i32) {
    %c1_i32 = arith.constant 1 : i32
    %0 = arith.muli %arg0, %c1_i32 : i32
    %1 = arith.addi %0, %arg1 : i32
    %c0_i32 = arith.constant 0 : i32
    %c0_i32_0 = arith.constant 0 : i32
    return %1, %c0_i32 : i32, i32
  }
  func.func @transform_4(%arg0: i32, %arg1: i32) -> (i32, i32, i32) {
    %c0_i32 = arith.constant 0 : i32
    %c0_i32_0 = arith.constant 0 : i32
    %c0_i32_1 = arith.constant 0 : i32
    return %arg0, %c0_i32, %c0_i32_0 : i32, i32, i32
  }
  func.func @transform_5(%arg0: i32, %arg1: i32) -> (i32, i32, i32) {
    %c0_i32 = arith.constant 0 : i32
    %c0_i32_0 = arith.constant 0 : i32
    %c0_i32_1 = arith.constant 0 : i32
    return %arg0, %c0_i32, %c0_i32_0 : i32, i32, i32
  }
}

</mosaic_0001>

<bundles_post_ra>
// kernel: tpu_custom_call.1
= control target key start
LH: loop header
LB: loop body
LE: loop exit
PB: predicated region body
PF: predicated region fallthrough
CT: control target
= control target key end

     0   :  { %s1688_s0 = inlined_call_operand.hbm [shape: f32[16,512], index: 0, kind: input, shape index: {}]   ;;  %s1689_s1 = inlined_call_operand.hbm [shape: f32[16,512], index: 1, kind: input, shape index: {}]   ;;  %s1690_s2 = inlined_call_operand.hbm [shape: f32[16,512], index: 2, kind: input, shape index: {}]   ;;  %s1691_s3 = inlined_call_operand.hbm [shape: f32[16,512], index: 3, kind: output, shape index: {0}]   ;;  %s1692_s4 = inlined_call_operand.hbm [shape: f32[2,1,512], index: 4, kind: output, shape index: {1}]   ;;  %s1693_s5 = inlined_call_operand.hbm [shape: f32[2,1,512], index: 5, kind: output, shape index: {2}]  }
   0x1   :  { %1704 = sst [smem:[#allocation23_spill]] %s1689_s1 }
   0x2   :  { %11 = vsyncpa [#allocation5], 0 }
   0x3   :  { %13 = vsyncpa [#allocation5 + $0x1], 0 }
   0x4   :  { %14 = vsyncpa [#allocation8], 0 }
   0x5   :  { %16 = vsyncpa [#allocation8 + $0x1], 0 }
   0x6   :  { %17 = vsyncpa [#allocation6], 0 }
   0x7   :  { %19 = vsyncpa [#allocation6 + $0x1], 0 }
   0x8   :  { %20 = vsyncpa [#allocation12], 0 }
   0x9   :  { %22 = vsyncpa [#allocation12 + $0x1], 0  ;;  %s1297_s18 = smov 0   ;;  %s1299_s19 = smov 0  }
   0xa   :  { %s1301_s20 = smov 0   ;;  %s1303_s21 = smov 0  }
   0xb   :  { %s1305_s22 = smov 0   ;;  %s1307_s23 = smov 0  }
   0xc LB: > { %1705 = sst [smem:[#allocation18_spill]] %s1254_s22  ;;  %s1328_s24 = sadd.s32 4294967295, %s1258_s23   ;;  %s1258_s23 = sphi %s1307_s23, %s28_s23   ;;  %s1254_s22 = sphi %s1305_s22, %s1734_s22   ;;  %s1250_s21 = sphi %s1303_s21, %s1733_s21   ;;  %s1246_s20 = sphi %s1301_s20, %s1737_s20   ;;  %s1242_s19 = sphi %s1299_s19, %s1736_s19   ;;  %s1238_s18 = sphi %s1297_s18, %s1735_s18  }
   0xd   : > { %1706 = sst [smem:[#allocation19_spill]] %s1258_s23  ;;  %s1694_s25 = sadd.s32 4294967294, %s1258_s23  }
   0xe   : > { %s40_s26 = sadd.s32 1, %s1254_s22  ;;  %s49_s27 = sadd.s32 1, %s1246_s20 }
   0xf   : > { %p42_p0 = scmp.ge.s32.totalorder %s40_s26, 2  ;;  %p56_p1 = scmp.ne.s32.totalorder %s1246_s20, %s1242_s19 }
  0x10   : > { %p57_p2 = scmp.eq.s32.totalorder %s1258_s23, 0  ;;  %p62_p3 = scmp.ne.s32.totalorder %s1242_s19, %s1238_s18 }
  0x11   : > { %s1739_s26 = smov (%p42_p0, %s40_s26), 0  ;;  %p63_p5 = scmp.eq.s32.totalorder %s1328_s24, 0 }
  0x12   : > { %1707 = sst [smem:[#allocation20_spill]] %s1739_s26  ;;  %p1340_p4 = por %p57_p2, %p56_p1 }
  0x13   : > { %s46_s29 = ssub.s32 %s1254_s22, %s1739_s26  ;;  %p144_p6 = scmp.eq.s32.totalorder %s1328_s24, 1 }
  0x14   : > { %p47_p7 = scmp.eq.s32.totalorder %s46_s29, 0  ;;  %p1348_p8 = por %p63_p5, %p62_p3 }
  0x15   : > { %p1352_p9 = por %p144_p6, %p56_p1  ;;  %p150_p10 = scmp.eq.s32.totalorder %s1694_s25, 1 }
  0x16   : > { %s1709_s30 = scalar_select %p1348_p8, 1, 0 }
  0x17   : > { %s1710_s6 = scalar_select %p1352_p9, 1, 0 }
  0x18   : > { %s1359_s7 = scalar_select %p47_p7, %s1246_s20, %s49_s27  }
  0x19   : > { %p1361_p11 = por %p150_p10, %p62_p3  ;;  %p947_p13 = scmp.lt.s32.totalorder %s1258_s23, 2 }
  0x1a   : > { %1711 = sst [smem:[#allocation21_spill]] %s1359_s7  ;;  %s1695_s9 = sand.u32 1, %s1246_s20  }
  0x1b   : > { %s1712_s8 = scalar_select %p1361_p11, 1, 0 }
  0x1c   : > { %s1370_s10 = sshll.u32 %s1695_s9, 5  ;;  %s1373_s11 = sshll.u32 %s1254_s22, 9 }
  0x1d   : > { %1713 = sst [smem:[#allocation22_spill]] %s1712_s8  ;;  %p1377_p0 = pnand %p947_p13, %p1340_p4 }
  0x1e   : > { %s242_s13 = sand.u32 1, %s1258_s23   ;;  %s1715_s1 = sld [smem:[#allocation23_spill]] }
  0x1f   : > { %s1714_s12 = scalar_select %p1377_p0, 1, 0 }
  0x20   : > { %s246_s17 = scalar_lea.vmem [#allocation7], %s1370_s10  ;;  %s1393_s28 = scalar_lea.sflag [#allocation8], %s242_s13 }
  0x21   : > { %s255_s27 = sshll.u32 %s246_s17, 4  ;;  %p1399_p4 = pneg %p1377_p0  ;;  %s1390_s27 = int_to_ptr.vmem [resolvable:$true] %s255_s27 }
  0x24   : > { %s1386_s16 = scalar_lea.hbm %s1715_s1, %s1373_s11  ;;  %s1027_s17 = scalar_lea.hbm %s1715_s1, 1024 }
  0x25   : > { %s1022_s29 = scalar_lea.hbm %s1386_s16, 512  ;;  %p1028_p7 = scmp.lt.u32.totalorder %s1386_s16, %s1715_s1 }
  0x26   : > { %p1023_p3 = scmp.ne.s32.totalorder %s1386_s16, %s1022_s29  ;;  %p1029_p10 = scmp.lt.u32.totalorder %s1027_s17, %s1022_s29 }
  0x27   : > { %p1031_p12 = scmp.lt.u32.totalorder %s1022_s29, %s1386_s16 }
  0x28   : > { %p1025_p5 = pnand %p1399_p4, %p1023_p3  ;;  %p1030_p13 = por %p1029_p10, %p1028_p7 }
  0x2a   : > { %p1026_p6 = pneg %p1025_p5  ;;  %p1032_p1 = por %p1031_p12, %p1030_p13 }
  0x2c   : > { %p1033_p2 = pnand %p1032_p1, %p1026_p6 }
  0x2e   : > { %1036 = shalt.err (!%p1033_p2)
}
  0x2f   : > { %s1037_s13 = scalar_lea.vmem %s1390_s27, 512  ;;  %s1260_s14 = smov [#allocation7]  }
  0x30   : > { %p1038_p3 = scmp.ne.s32.totalorder %s1390_s27, %s1037_s13  ;;  %s1042_s15 = sshll.u32 %s1260_s14, 4  ;;  %s1043_s15 = int_to_ptr.vmem [resolvable:$false] %s1042_s15 }
  0x31   : > { %s1044_s26 = scalar_lea.vmem %s1043_s15, 1024  ;;  %p1045_p9 = scmp.lt.s32.totalorder %s1390_s27, %s1043_s15 }
  0x32   : > { %p1040_p5 = pnand %p1038_p3, %p1399_p4  ;;  %p1046_p8 = scmp.lt.s32.totalorder %s1044_s26, %s1037_s13 }
  0x34   : > { %p1041_p11 = pneg %p1040_p5  ;;  %p1047_p7 = por %p1046_p8, %p1045_p9 }
  0x36   : > { %p1048_p10 = pnand %p1047_p7, %p1041_p11 }
  0x38   : > { %1051 = shalt.err (!%p1048_p10)
}
  0x39   : > { %933 = dma.hbm_to_vmem [thread:$0]  (!%p1377_p0), %s1386_s16, 512, %s1390_s27, %s1393_s28  }
  0x3a   : > { %p1717_p12 = scmp.lt.s32.totalorder %s1258_s23, 3  ;;  %p1718_p1 = scmp.ge.s32.totalorder %s1258_s23, 1 }
  0x3b   : > { %s1435_s13 = scalar_lea.hbm %s1688_s0, %s1373_s11  ;;  %s226_s14 = scalar_lea.vmem [#allocation4], %s1370_s10 }
  0x3c   : > { %p1427_p2 = pnand %p1718_p1, %p1717_p12  ;;  %s235_s15 = sshll.u32 %s226_s14, 4  ;;  %s1438_s15 = int_to_ptr.vmem [resolvable:$true] %s235_s15 }
  0x3d   : > { %s1444_s26 = scalar_lea.hbm %s1690_s2, %s1373_s11  ;;  %s1720_s1 = sand.u32 1, %s1246_s20  }
  0x3e   : > { %s1719_s9 = scalar_select %p1427_p2, 1, 0 }
  0x3f   : > { %s223_s22 = scalar_lea.sflag [#allocation5], %s1720_s1  ;;  %s1052_s7 = scalar_lea.hbm %s1435_s13, 512 }
  0x40   : > { %p1053_p8 = scmp.ne.s32.totalorder %s1435_s13, %s1052_s7  ;;  %s1057_s23 = scalar_lea.hbm %s1688_s0, 1024 }
  0x41   : > { %p1058_p6 = scmp.lt.u32.totalorder %s1435_s13, %s1688_s0  ;;  %p1059_p13 = scmp.lt.u32.totalorder %s1057_s23, %s1052_s7 }
  0x42   : > { %p1055_p9 = pnand %p1053_p8, %p1399_p4  ;;  %p1061_p5 = scmp.lt.u32.totalorder %s1052_s7, %s1435_s13 }
  0x43   : > { %p1060_p3 = por %p1059_p13, %p1058_p6 }
  0x44   : > { %p1056_p11 = pneg %p1055_p9 }
  0x45   : > { %p1062_p7 = por %p1061_p5, %p1060_p3 }
  0x47   : > { %p1063_p10 = pnand %p1062_p7, %p1056_p11 }
  0x49   : > { %1066 = shalt.err (!%p1063_p10)
}
  0x4a   : > { %s1067_s1 = scalar_lea.vmem %s1438_s15, 512  ;;  %s1261_s11 = smov [#allocation4]  }
  0x4b   : > { %p1068_p12 = scmp.ne.s32.totalorder %s1438_s15, %s1067_s1  ;;  %s1072_s16 = sshll.u32 %s1261_s11, 4  ;;  %s1073_s16 = int_to_ptr.vmem [resolvable:$false] %s1072_s16 }
  0x4c   : > { %s1074_s8 = scalar_lea.vmem %s1073_s16, 1024  ;;  %p1075_p9 = scmp.lt.s32.totalorder %s1438_s15, %s1073_s16 }
  0x4d   : > { %p1070_p1 = pnand %p1068_p12, %p1399_p4  ;;  %p1076_p2 = scmp.lt.s32.totalorder %s1074_s8, %s1067_s1 }
  0x4f   : > { %p1071_p8 = pneg %p1070_p1  ;;  %p1077_p6 = por %p1076_p2, %p1075_p9 }
  0x51   : > { %p1078_p13 = pnand %p1077_p6, %p1071_p8 }
  0x53   : > { %1081 = shalt.err (!%p1078_p13)
}
  0x54   : > { %930 = dma.hbm_to_vmem [thread:$0]  (!%p1377_p0), %s1435_s13, 512, %s1438_s15, %s223_s22  }
  0x55   : > { %s266_s23 = scalar_lea.vmem [#allocation9], %s1370_s10  ;;  %s1082_s27 = scalar_lea.hbm %s1444_s26, 512 }
  0x56   : > { %s275_s7 = sshll.u32 %s266_s23, 4  ;;  %p1083_p11 = scmp.ne.s32.totalorder %s1444_s26, %s1082_s27  ;;  %s276_s7 = int_to_ptr.vmem [resolvable:$true] %s275_s7 }
  0x57   : > { %s1087_s14 = scalar_lea.hbm %s1690_s2, 1024  ;;  %p1088_p5 = scmp.lt.u32.totalorder %s1444_s26, %s1690_s2 }
  0x58   : > { %p1085_p2 = pnand %p1083_p11, %p1399_p4  ;;  %p1089_p7 = scmp.lt.u32.totalorder %s1087_s14, %s1082_s27 }
  0x59   : > { %p1091_p12 = scmp.lt.u32.totalorder %s1082_s27, %s1444_s26 }
  0x5a   : > { %p1086_p3 = pneg %p1085_p2  ;;  %p1090_p10 = por %p1089_p7, %p1088_p5 }
  0x5c   : > { %p1092_p1 = por %p1091_p12, %p1090_p10 }
  0x5e   : > { %p1093_p8 = pnand %p1092_p1, %p1086_p3 }
  0x60   : > { %1096 = shalt.err (!%p1093_p8)
}
  0x61   : > { %s1097_s22 = scalar_lea.vmem %s276_s7, 512  ;;  %s1262_s10 = smov [#allocation9]  }
  0x62   : > { %p1098_p9 = scmp.ne.s32.totalorder %s276_s7, %s1097_s22  ;;  %s1102_s13 = sshll.u32 %s1262_s10, 4  ;;  %s1103_s13 = int_to_ptr.vmem [resolvable:$false] %s1102_s13 }
  0x63   : > { %s1104_s15 = scalar_lea.vmem %s1103_s13, 1024  ;;  %p1105_p11 = scmp.lt.s32.totalorder %s276_s7, %s1103_s13 }
  0x64   : > { %p1100_p6 = pnand %p1098_p9, %p1399_p4  ;;  %p1106_p2 = scmp.lt.s32.totalorder %s1104_s15, %s1097_s22 }
  0x66   : > { %p1101_p13 = pneg %p1100_p6  ;;  %p1107_p0 = por %p1106_p2, %p1105_p11 }
  0x68   : > { %p1108_p5 = pnand %p1107_p0, %p1101_p13 }
  0x6a   : > { %1111 = shalt.err (!%p1108_p5)
}
  0x6b   : > { %p1721_p7 = scmp.ne.s32.totalorder %s1714_s12, 0  ;;  %p1722_p3 = scmp.ne.s32.totalorder %s1719_s9, 0 }
  0x6c   : > { %s1491_s25 = sand.u32 (!%p1722_p3), 1, %s1242_s19   ;;  %p1723_p0 = scmp.ne.s32.totalorder (!%p1722_p3), %s1709_s30, 0 }
  0x6d   : > { %936 = dma.hbm_to_vmem [thread:$0]  (!%p1721_p7), %s1444_s26, 512, %s276_s7, %s1393_s28  }
  0x6e   : > { %284 = sbr.rel (%p1722_p3) target bundleno = 239 (0xef), region = 32  ;;  %s1494_s16 = sshll.u32 (!%p1722_p3), %s1491_s25, 5 }
  0x6f   : > { %s287_s8 = scalar_lea.sflag (!%p1722_p3), [#allocation5], %s1491_s25  ;;  %s290_s23 = scalar_lea.vmem (!%p1722_p3), [#allocation4], %s1494_s16 }
  0x75   : > { %1221 = dma.done.wait (%p1723_p0), %s287_s8, 512  }
  0x76   : > { %1223 = vsyncadd (%p1723_p0), %s287_s8, 4294966784  ;;  %s295_s12 = sand.u32 1, %s1328_s24   ;;  %s299_s9 = scalar_lea.vmem [#allocation7], %s1494_s16 }
  0x77   : > { %s296_s28 = scalar_lea.sflag [#allocation8], %s295_s12 }
  0x78   : > { %1225 = dma.done.wait (%p1723_p0), %s296_s28, 1024  }
  0x79   : > { %1227 = vsyncadd (%p1723_p0), %s296_s28, 4294966272  ;;  %v371_v0 = vld [vmem:[%s290_s23] sm:$0xff]  ;;  %v372_v1 = vld [vmem:[%s290_s23 + $0x8] sm:$0xff]  ;;  %v1263_v18 = vmov 1966171168   ;;  %v551_v20 = vlaneseq  ;;  %s308_s30 = scalar_lea.vmem [#allocation9], %s1494_s16 }
  0x7a   : > { %v373_v2 = vld [vmem:[%s290_s23 + $0x10] sm:$0xff]  ;;  %v374_v3 = vld [vmem:[%s290_s23 + $0x18] sm:$0xff]  ;;  %v1510_v4 = vld [vmem:[%s299_s9] sm:$0xff]  ;;  %v383_v6 = vmul.f32 0.5, %v371_v0  ;;  %v384_v7 = vmul.f32 0.5, %v372_v1  ;;  %v549_v19 = vunpack.c.l.s4 %v1263_v18  ;;  %s1531_s26 = scalar_lea.vmem [#allocation10], %s1494_s16 }
  0x7b   : > { %v1512_v5 = vld [vmem:[%s299_s9 + $0x8] sm:$0xff]  ;;  %v385_v8 = vmul.f32 0.5, %v373_v2  ;;  %v1514_v9 = vld [vmem:[%s299_s9 + $0x10] sm:$0xff]  ;;  %v386_v10 = vmul.f32 0.5, %v374_v3  ;;  %v580_v11 = vrot.slane %v1510_v4, 4  ;;  %v1518_v13 = vld [vmem:[%s299_s9 + $0x18] sm:$0xff] }
  0x7c   : > { %v586_v12 = vrot.slane %v1512_v5, 4  ;;  %998 = vtanh.f32 %v383_v6  ;;  %v592_v14 = vrot.slane %v1514_v9, 4  ;;  %v598_v15 = vrot.slane %v1518_v13, 4  ;;  %v379_v48 = vld [vmem:[%s308_s30] sm:$0xff]  ;;  %v380_v49 = vld [vmem:[%s308_s30 + $0x8] sm:$0xff]  ;;  %s660_s7 = sshll.u32 %s1531_s26, 4  ;;  %s1541_s7 = int_to_ptr.vmem [resolvable:$true] %s660_s7 }
  0x7d   : > { %1000 = vtanh.f32 %v384_v7  ;;  %v581_v16 = vadd.f32 %v580_v11, %v1510_v4  ;;  %v550_v28 = vunpack.c.0.s8 %v549_v19  ;;  %v552_v29 = vshrl.u32 %v551_v20, 7  ;;  %v381_v55 = vld [vmem:[%s308_s30 + $0x10] sm:$0xff]  ;;  %s912_s27 = sshll.u32 %s1250_s21, 9  ;;  %v382_v60 = vld [vmem:[%s308_s30 + $0x18] sm:$0xff]  ;;  %s892_s29 = sshll.u32 %s1491_s25, 2 }
  0x7e   : > { %1002 = vtanh.f32 %v385_v8  ;;  %v587_v17 = vadd.f32 %v586_v12, %v1512_v5  ;;  %v593_v23 = vadd.f32 %v592_v14, %v1514_v9  ;;  %v599_v24 = vadd.f32 %v598_v15, %v1518_v13  ;;  %s1549_s1 = scalar_lea.hbm %s1691_s3, %s912_s27  ;;  %s635_s11 = scalar_lea.sflag [#allocation6], %s1491_s25 }
  0x7f   : > { %1004 = vtanh.f32 %v386_v10  ;;  %v582_v21 = vrot.slane %v581_v16, 2  ;;  %v1527_v41 = vsub.s32 %v550_v28, %v552_v29  ;;  %v894_v63 = vadd.f32 -0.5, %v379_v48  ;;  %s1112_s22 = scalar_lea.vmem %s1541_s7, 512  ;;  %p1726_p10 = scmp.ne.s32.totalorder %s1710_s6, 0 }
  0x80   : > { %v588_v22 = vrot.slane %v587_v17, 2  ;;  %v594_v27 = vrot.slane %v593_v23, 2  ;;  %v600_v30 = vrot.slane %v599_v24, 2  ;;  %v895_v0 = vadd.f32 -0.5, %v380_v49  ;;  %p1113_p4 = scmp.ne.s32.totalorder %s1541_s7, %s1112_s22  ;;  %s1264_s10 = smov [#allocation10]  }
  0x81   : > { %v583_v25 = vadd.f32 %v582_v21, %v581_v16  ;;  %v896_v7 = vadd.f32 -0.5, %v381_v55  ;;  %v897_v10 = vadd.f32 -0.5, %v382_v60  ;;  %v407_v14 = vmul.f32 2.0, %v894_v63  ;;  %s1116_s13 = sshll.u32 %s1264_s10, 4  ;;  %s1117_s13 = int_to_ptr.vmem [resolvable:$false] %s1116_s13 }
  0x82   : > { %v589_v26 = vadd.f32 %v588_v22, %v587_v17  ;;  %v595_v33 = vadd.f32 %v594_v27, %v593_v23  ;;  %v601_v34 = vadd.f32 %v600_v30, %v599_v24  ;;  %vm1553_vm0 = vcmp.lt.s32.totalorder %v551_v20, 512  ;;  %p1114_p12 = pnand %p1113_p4, %p1726_p10  ;;  %s1118_s15 = scalar_lea.vmem %s1117_s13, 1024 }
  0x83   : > { %v584_v31 = vrot.slane %v583_v25, 1  ;;  %v408_v17 = vmul.f32 2.0, %v895_v0  ;;  %p1119_p8 = scmp.lt.s32.totalorder %s1541_s7, %s1117_s13  ;;  %p1120_p9 = scmp.lt.s32.totalorder %s1118_s15, %s1112_s22 }
  0x84   : > { %v590_v32 = vrot.slane %v589_v26, 1  ;;  %v596_v38 = vrot.slane %v595_v33, 1  ;;  %v602_v42 = vrot.slane %v601_v34, 1  ;;  %p1115_p1 = pneg %p1114_p12 }
  0x85   : > { %v585_v36 = vadd.f32 %v584_v31, %v583_v25  ;;  %p1121_p6 = por %p1120_p9, %p1119_p8 }
  0x86   : > { %v999_v35 = vpop.eup %998  ;;  %v591_v37 = vadd.f32 %v590_v32, %v589_v26  ;;  %v597_v45 = vadd.f32 %v596_v38, %v595_v33  ;;  %v603_v52 = vadd.f32 %v602_v42, %v601_v34 }
  0x87   : > { %v1001_v39 = vpop.eup %1000  ;;  %v391_v40 = vmul.f32 0.5, %v999_v35  ;;  %p1122_p13 = pnand %p1121_p6, %p1115_p1 }
  0x88   : > { %v1003_v43 = vpop.eup %1002  ;;  %v392_v44 = vmul.f32 0.5, %v1001_v39  ;;  %v608_v46 = vcombine.low %v585_v36, %v591_v37  ;;  %v609_v58 = vcombine.low %v597_v45, %v603_v52 }
  0x89   : > { %v1005_v47 = vpop.eup %1004  ;;  %v393_v50 = vmul.f32 0.5, %v1003_v43  ;;  %v395_v51 = vadd.f32 0.5, %v391_v40 }
  0x8a   : > { %v394_v53 = vmul.f32 0.5, %v1005_v47  ;;  %v396_v54 = vadd.f32 0.5, %v392_v44  ;;  %v616_v59 = vrot.slane %v608_v46, %v1527_v41  ;;  %v623_v3 = vrot.slane %v609_v58, %v1527_v41 }
  0x8b   : > { %v397_v56 = vadd.f32 0.5, %v393_v50  ;;  %v399_v57 = vmul.f32 %v395_v51, %v1510_v4 }
  0x8c   : > { %v398_v61 = vadd.f32 0.5, %v394_v53  ;;  %v400_v62 = vmul.f32 %v396_v54, %v1512_v5  ;;  %v624_v12 = vcombine.low %v616_v59, %v623_v3 }
  0x8d   : > { %v401_v1 = vmul.f32 %v397_v56, %v1514_v9  ;;  %1006 = vlog2.f32 %v399_v57  ;;  %v443_v2 = vsub.f32 1.0, %v399_v57  ;;  %483 = vst [vmem:[%s1531_s26] sm:$0xff] %v399_v57 }
  0x8e   : > { %v402_v6 = vmul.f32 %v398_v61, %v1518_v13  ;;  %1008 = vlog2.f32 %v400_v62  ;;  %v444_v8 = vsub.f32 1.0, %v400_v62  ;;  %484 = vst [vmem:[%s1531_s26 + $0x8] sm:$0xff] %v400_v62  ;;  %v631_v18 = vrot.slane %v624_v12, %v1527_v41 }
  0x8f   : > { %1010 = vlog2.f32 %v401_v1  ;;  %v445_v11 = vsub.f32 1.0, %v401_v1  ;;  %485 = vst [vmem:[%s1531_s26 + $0x10] sm:$0xff] %v401_v1 }
  0x90   : > { %1012 = vlog2.f32 %v402_v6  ;;  %v446_v15 = vsub.f32 1.0, %v402_v6  ;;  %486 = vst [vmem:[%s1531_s26 + $0x18] sm:$0xff] %v402_v6 }
  0x91   : > { %1014 = vlog2.f32 %v443_v2 }
  0x92   : > { %1125 = shalt.err (!%p1122_p13)
}
  0x93   : > { %s1126_s16 = scalar_lea.hbm %s1549_s1, 512  ;;  %s1130_s28 = scalar_lea.hbm %s1691_s3, 1024 }
  0x94   : > { %p1127_p11 = scmp.ne.s32.totalorder %s1549_s1, %s1126_s16  ;;  %p1131_p7 = scmp.lt.u32.totalorder %s1549_s1, %s1691_s3 }
  0x95   : > { %p1132_p3 = scmp.lt.u32.totalorder %s1130_s28, %s1126_s16  ;;  %p1134_p4 = scmp.lt.u32.totalorder %s1126_s16, %s1549_s1 }
  0x96   : > { %p1128_p2 = pnand %p1127_p11, %p1726_p10 }
  0x97   : > { %p1133_p0 = por %p1132_p3, %p1131_p7 }
  0x98   : > { %p1129_p5 = pneg %p1128_p2 }
  0x99   : > { %p1135_p12 = por %p1134_p4, %p1133_p0 }
  0x9b   : > { %p1136_p1 = pnand %p1135_p12, %p1129_p5 }
  0x9d   : > { %1139 = shalt.err (!%p1136_p1)
}
  0x9e   : > { %921 = dma.vmem_to_hbm [thread:$0]  (%p1726_p10), %s1541_s7, 512, %s1549_s1, %s635_s11   ;;  %v409_v19 = vmul.f32 2.0, %v896_v7  ;;  %1016 = vlog2.f32 %v444_v8  ;;  %v410_v20 = vmul.f32 2.0, %v897_v10  ;;  %v423_v21 = vmax.f32 %v407_v14, 0.0  ;;  %v1007_v24 = vpop.eup %1006 }
  0x9f   : > { %1018 = vlog2.f32 %v445_v11  ;;  %s1583_s26 = scalar_lea.vmem [#allocation13], %s892_s29  ;;  %v424_v22 = vmax.f32 %v408_v17, 0.0  ;;  %v1009_v26 = vpop.eup %1008  ;;  %v432_v28 = vmul.f32 0.6931472, %v1007_v24  ;;  %s347_s7 = scalar_lea.vmem [#allocation11], %s892_s29 }
  0xa0   : > { %633 = vst.msk [vmem:[%s1583_s26] sm:$0xf] %vm1553_vm0, %v631_v18  ;;  %1020 = vlog2.f32 %v446_v15  ;;  %v425_v23 = vmax.f32 %v409_v19, 0.0  ;;  %v426_v25 = vmax.f32 %v410_v20, 0.0  ;;  %v427_v27 = vmin.f32 %v423_v21, 1.0  ;;  %v1011_v29 = vpop.eup %1010  ;;  %s674_s27 = sshll.u32 %s347_s7, 4  ;;  %s1598_s27 = int_to_ptr.vmem [resolvable:$true] %s674_s27 }
  0xa1   : > { %v428_v30 = vmin.f32 %v424_v22, 1.0  ;;  %v434_v31 = vmul.f32 0.6931472, %v1009_v26  ;;  %v1013_v32 = vpop.eup %1012  ;;  %v436_v34 = vmul.f32 0.6931472, %v1011_v29  ;;  %v439_v35 = vmax.f32 %v432_v28, -100.0 }
  0xa2   : > { %v429_v33 = vmin.f32 %v425_v23, 1.0  ;;  %v1015_v36 = vpop.eup %1014  ;;  %v430_v37 = vmin.f32 %v426_v25, 1.0  ;;  %v438_v38 = vmul.f32 0.6931472, %v1013_v32  ;;  %v463_v44 = vsub.f32 1.0, %v427_v27  ;;  %s913_s17 = sshll.u32 %s1250_s21, 6 }
  0xa3   : > { %v440_v39 = vmax.f32 %v434_v31, -100.0  ;;  %v441_v42 = vmax.f32 %v436_v34, -100.0  ;;  %v448_v43 = vmul.f32 0.6931472, %v1015_v36  ;;  %v464_v48 = vsub.f32 1.0, %v428_v30  ;;  %s688_s14 = sshll.u32 %s1583_s26, 4  ;;  %s1604_s22 = scalar_lea.hbm %s1692_s4, %s913_s17  ;;  %s1606_s14 = int_to_ptr.vmem [resolvable:$true] %s688_s14 }
  0xa4   : > { %v442_v46 = vmax.f32 %v438_v38, -100.0  ;;  %v459_v52 = vmul.f32 %v439_v35, %v427_v27  ;;  %v465_v53 = vsub.f32 1.0, %v429_v33  ;;  %v466_v57 = vsub.f32 1.0, %v430_v37  ;;  %s1611_s21 = scalar_lea.hbm %s1693_s5, %s913_s17  ;;  %s1617_s10 = scalar_lea.sflag [#allocation12], %s295_s12 }
  0xa5   : > { %v455_v51 = vmax.f32 %v448_v43, -100.0  ;;  %v460_v56 = vmul.f32 %v440_v39, %v428_v30  ;;  %v461_v59 = vmul.f32 %v441_v42, %v429_v33  ;;  %s1140_s13 = scalar_lea.vmem %s1598_s27, 64  ;;  %s1265_s15 = smov [#allocation11]  }
  0xa6   : > { %v462_v62 = vmul.f32 %v442_v46, %v430_v37  ;;  %p1141_p8 = scmp.ne.s32.totalorder %s1598_s27, %s1140_s13  ;;  %s1144_s16 = sshll.u32 %s1265_s15, 4  ;;  %s1145_s16 = int_to_ptr.vmem [resolvable:$false] %s1144_s16 }
  0xa7   : > { %v467_v60 = vmul.f32 %v463_v44, %v455_v51  ;;  %s1146_s8 = scalar_lea.vmem %s1145_s16, 128  ;;  %p1147_p13 = scmp.lt.s32.totalorder %s1598_s27, %s1145_s16 }
  0xa8   : > { %v1017_v40 = vpop.eup %1016  ;;  %p1142_p9 = pnand %p1141_p8, %p1726_p10  ;;  %p1148_p11 = scmp.lt.s32.totalorder %s1146_s8, %s1140_s13 }
  0xa9   : > { %v1019_v45 = vpop.eup %1018  ;;  %v450_v47 = vmul.f32 0.6931472, %v1017_v40  ;;  %v471_v1 = vadd.f32 %v467_v60, %v459_v52 }
  0xaa   : > { %v1021_v49 = vpop.eup %1020  ;;  %v452_v50 = vmul.f32 0.6931472, %v1019_v45  ;;  %p1143_p6 = pneg %p1142_p9  ;;  %p1149_p2 = por %p1148_p11, %p1147_p13 }
  0xab   : > { %v454_v54 = vmul.f32 0.6931472, %v1021_v49  ;;  %v456_v55 = vmax.f32 %v450_v47, -100.0  ;;  %v475_v7 = vsub.f32 0.0, %v471_v1 }
  0xac   : > { %v457_v58 = vmax.f32 %v452_v50, -100.0  ;;  %p1150_p5 = pnand %p1149_p2, %p1143_p6 }
  0xad   : > { %v458_v61 = vmax.f32 %v454_v54, -100.0  ;;  %v468_v63 = vmul.f32 %v464_v48, %v456_v55  ;;  %v479_v12 = vmul.f32 %v475_v7, %v1510_v4 }
  0xae   : > { %v469_v0 = vmul.f32 %v465_v53, %v457_v58 }
  0xaf   : > { %v470_v2 = vmul.f32 %v466_v57, %v458_v61  ;;  %v472_v3 = vadd.f32 %v468_v63, %v460_v56  ;;  %v518_v18 = vrot.slane %v479_v12, 4 }
  0xb0   : > { %v473_v6 = vadd.f32 %v469_v0, %v461_v59 }
  0xb1   : > { %v474_v8 = vadd.f32 %v470_v2, %v462_v62  ;;  %v476_v10 = vsub.f32 0.0, %v472_v3  ;;  %v519_v21 = vadd.f32 %v518_v18, %v479_v12 }
  0xb2   : > { %v477_v11 = vsub.f32 0.0, %v473_v6 }
  0xb3   : > { %v478_v14 = vsub.f32 0.0, %v474_v8  ;;  %v480_v15 = vmul.f32 %v476_v10, %v1512_v5  ;;  %v520_v25 = vrot.slane %v519_v21, 2 }
  0xb4   : > { %v481_v17 = vmul.f32 %v477_v11, %v1514_v9 }
  0xb5   : > { %v482_v19 = vmul.f32 %v478_v14, %v1518_v13  ;;  %v524_v20 = vrot.slane %v480_v15, 4  ;;  %v521_v29 = vadd.f32 %v520_v25, %v519_v21 }
  0xb6   : > { %v530_v22 = vrot.slane %v481_v17, 4 }
  0xb7   : > { %v525_v23 = vadd.f32 %v524_v20, %v480_v15  ;;  %v536_v24 = vrot.slane %v482_v19, 4  ;;  %v522_v5 = vrot.slane %v521_v29, 1 }
  0xb8   : > { %v531_v26 = vadd.f32 %v530_v22, %v481_v17 }
  0xb9   : > { %v526_v27 = vrot.slane %v525_v23, 2  ;;  %v537_v28 = vadd.f32 %v536_v24, %v482_v19  ;;  %v523_v33 = vadd.f32 %v522_v5, %v521_v29 }
  0xba   : > { %v532_v30 = vrot.slane %v531_v26, 2 }
  0xbb   : > { %v527_v4 = vadd.f32 %v526_v27, %v525_v23  ;;  %v538_v31 = vrot.slane %v537_v28, 2 }
  0xbc   : > { %v533_v9 = vadd.f32 %v532_v30, %v531_v26 }
  0xbd   : > { %v528_v32 = vrot.slane %v527_v4, 1  ;;  %v539_v13 = vadd.f32 %v538_v31, %v537_v28 }
  0xbe   : > { %v534_v34 = vrot.slane %v533_v9, 1 }
  0xbf   : > { %v529_v35 = vadd.f32 %v528_v32, %v527_v4  ;;  %v540_v36 = vrot.slane %v539_v13, 1 }
  0xc0   : > { %v535_v37 = vadd.f32 %v534_v34, %v533_v9 }
  0xc1   : > { %v541_v38 = vadd.f32 %v540_v36, %v539_v13  ;;  %v546_v39 = vcombine.low %v523_v33, %v529_v35 }
  0xc3   : > { %v547_v40 = vcombine.low %v535_v37, %v541_v38  ;;  %v554_v42 = vrot.slane %v546_v39, %v1527_v41 }
  0xc5   : > { %v561_v43 = vrot.slane %v547_v40, %v1527_v41 }
  0xc7   : > { %v562_v44 = vcombine.low %v554_v42, %v561_v43 }
  0xc9   : > { %v569_v45 = vrot.slane %v562_v44, %v1527_v41 }
  0xcb   : > { %575 = vst.msk [vmem:[%s347_s7] sm:$0xf] %vm1553_vm0, %v569_v45 }
  0xcc   : > { %1153 = shalt.err (!%p1150_p5)
}
  0xcd   : > { %s1154_s24 = scalar_lea.hbm %s1604_s22, 64  ;;  %s1158_s28 = scalar_lea.hbm %s1692_s4, 128 }
  0xce   : > { %p1155_p7 = scmp.ne.s32.totalorder %s1604_s22, %s1154_s24  ;;  %p1159_p4 = scmp.lt.u32.totalorder %s1604_s22, %s1692_s4 }
  0xcf   : > { %p1160_p12 = scmp.lt.u32.totalorder %s1158_s28, %s1154_s24  ;;  %p1162_p8 = scmp.lt.u32.totalorder %s1154_s24, %s1604_s22 }
  0xd0   : > { %p1156_p3 = pnand %p1155_p7, %p1726_p10 }
  0xd1   : > { %p1161_p1 = por %p1160_p12, %p1159_p4 }
  0xd2   : > { %p1157_p0 = pneg %p1156_p3 }
  0xd3   : > { %p1163_p9 = por %p1162_p8, %p1161_p1 }
  0xd5   : > { %p1164_p6 = pnand %p1163_p9, %p1157_p0 }
  0xd7   : > { %1167 = shalt.err (!%p1164_p6)
}
  0xd8   : > { %922 = dma.vmem_to_hbm [thread:$0]  (%p1726_p10), %s1598_s27, 64, %s1604_s22, %s1617_s10  }
  0xd9   : > { %s1168_s26 = scalar_lea.vmem %s1606_s14, 64  ;;  %s1266_s7 = smov [#allocation13]  }
  0xda   : > { %p1169_p13 = scmp.ne.s32.totalorder %s1606_s14, %s1168_s26  ;;  %s1172_s17 = sshll.u32 %s1266_s7, 4  ;;  %s1173_s17 = int_to_ptr.vmem [resolvable:$false] %s1172_s17 }
  0xdb   : > { %s1174_s1 = scalar_lea.vmem %s1173_s17, 128  ;;  %p1175_p5 = scmp.lt.s32.totalorder %s1606_s14, %s1173_s17 }
  0xdc   : > { %p1170_p11 = pnand %p1169_p13, %p1726_p10  ;;  %p1176_p7 = scmp.lt.s32.totalorder %s1174_s1, %s1168_s26 }
  0xde   : > { %p1171_p2 = pneg %p1170_p11  ;;  %p1177_p3 = por %p1176_p7, %p1175_p5 }
  0xe0   : > { %p1178_p0 = pnand %p1177_p3, %p1171_p2 }
  0xe2   : > { %1181 = shalt.err (!%p1178_p0)
}
  0xe3   : > { %s1182_s27 = scalar_lea.hbm %s1611_s21, 64  ;;  %s1186_s25 = scalar_lea.hbm %s1693_s5, 128 }
  0xe4   : > { %p1183_p4 = scmp.ne.s32.totalorder %s1611_s21, %s1182_s27  ;;  %p1187_p8 = scmp.lt.u32.totalorder %s1611_s21, %s1693_s5 }
  0xe5   : > { %p1188_p9 = scmp.lt.u32.totalorder %s1186_s25, %s1182_s27  ;;  %p1190_p13 = scmp.lt.u32.totalorder %s1182_s27, %s1611_s21 }
  0xe6   : > { %p1184_p12 = pnand %p1183_p4, %p1726_p10 }
  0xe7   : > { %p1189_p6 = por %p1188_p9, %p1187_p8 }
  0xe8   : > { %p1185_p1 = pneg %p1184_p12 }
  0xe9   : > { %p1191_p11 = por %p1190_p13, %p1189_p6 }
  0xeb   : > { %p1192_p2 = pnand %p1191_p11, %p1185_p1 }
  0xed   : > { %1195 = shalt.err (!%p1192_p2)
}
  0xee   : > { %923 = dma.vmem_to_hbm [thread:$0]  (%p1726_p10), %s1606_s14, 64, %s1611_s21, %s1617_s10  }
  0xef PF: > { %s1727_s15 = sld [smem:[#allocation22_spill]]  ;;  %s1728_s16 = sld [smem:[#allocation19_spill]] }
  0xf0   : > { %s700_s8 = sand.u32 1, %s1238_s18  }
  0xf1   : > { %s701_s24 = scalar_lea.sflag [#allocation6], %s700_s8 }
  0xf5   : > { %p1729_p5 = scmp.ne.s32.totalorder %s1727_s15, 0  ;;  %p1730_p7 = scmp.ge.s32.totalorder %s1728_s16, 2 }
  0xf7   : > { %p938_p3 = pnand %p1730_p7, %p1729_p5 }
  0xf9   : > { %1229 = dma.done.wait (!%p938_p3), %s701_s24, 512  }
  0xfa   : > { %1231 = vsyncadd (!%p938_p3), %s701_s24, 4294966784  ;;  %s1731_s12 = sadd.s32 4294967294, %s1728_s16  }
  0xfb   : > { %s709_s23 = sand.u32 1, %s1731_s12  }
  0xfc   : > { %s710_s28 = scalar_lea.sflag [#allocation12], %s709_s23 }
  0xfd   : > { %1233 = dma.done.wait (!%p938_p3), %s710_s28, 128  }
  0xfe   : > { %1235 = vsyncadd (!%p938_p3), %s710_s28, 4294967168  ;;  %s28_s23 = sadd.s32 1, %s1728_s16   ;;  %s1732_s6 = sld [smem:[#allocation21_spill]] }
  0xff   : > { %p25_p10 = scmp.ge.s32.totalorder %s28_s23, 4   ;;  %s1733_s21 = sld [smem:[#allocation18_spill]] }
 0x100   : > { %s1734_s22 = sld [smem:[#allocation20_spill]]  ;;  %s1735_s18 = smov %s1242_s19 }
 0x101   : > { %s1736_s19 = smov %s1246_s20  ;;  %27 = sbr.rel (!%p25_p10) target bundleno = 12 (0xc), region = 141 }
 0x104   : > { %s1737_s20 = smov %s1732_s6 }
 0x108   :  { %724 = vsyncpa [#allocation5], 1 }
 0x109   :  { %726 = vsyncpa [#allocation5 + $0x1], 1 }
 0x10a   :  { %727 = vsyncpa [#allocation8], 1 }
 0x10b   :  { %729 = vsyncpa [#allocation8 + $0x1], 1 }
 0x10c   :  { %730 = vsyncpa [#allocation6], 1 }
 0x10d   :  { %732 = vsyncpa [#allocation6 + $0x1], 1 }
 0x10e   :  { %733 = vsyncpa [#allocation12], 1 }
 0x10f   :  { %735 = vsyncpa [#allocation12 + $0x1], 1 }

</bundles_post_ra>
